<compile_context>
chip_gen: v7x
topology: tpu7x:2x2x1
jax: 0.10.0
libtpu: 0.0.40
codegen_flags: <defaults>
</compile_context>

<pallas_src>
import functools

import jax
import jax.numpy as jnp
from jax import lax
from jax.experimental import pallas as pl
from jax.experimental.pallas import tpu as pltpu


def _block_kernel(p_ref, w_ref, o_ref, *, PP, chunk):
    """One grid step = nB images (all folded into the matmul's lane dim).

    p_ref: (1, K_pad, PP*chunk)  pool-ordered im2col patches (+ ones row for bias)
    w_ref: (Cout, K_pad)         flattened conv weights (+ bias column)
    o_ref: (1, Cout, chunk)      pooled + ReLU'd output, lane-dense, f32
    """
    # Single MXU matmul; bias is already inside (ones-row x bias-column).
    y = jnp.dot(w_ref[...], p_ref[0], preferred_element_type=jnp.float32)

    # Max-pool = PP-1 elementwise maxima over 128-aligned lane chunks
    # (chunk = nB * Mlane, always a multiple of 128 -> pure vreg-aligned VPU work).
    m = y[:, 0:chunk]
    for i in range(1, PP):
        m = jnp.maximum(m, y[:, i * chunk:(i + 1) * chunk])

    # ReLU + one unmasked lane-dense store (last dim = chunk >= 128).
    o_ref[0] = jnp.maximum(m, 0.0).astype(o_ref.dtype)


def block_forward(x_nchw, w_oihw, bias, pool_size, *,
                  compute_dtype=jnp.float32, grid_blocks=None):
    """Pallas equivalent of Block.forward.  x_nchw: (N, Cin, H, W) float32.

    compute_dtype=jnp.bfloat16 feeds the MXU in bf16 (accumulation stays f32);
    the default f32 keeps tight numerical agreement with PyTorch.
    grid_blocks: number of grid steps the batch is split over.  Default: 2 when
    N is even (keeps both v7x TensorCores busy); use 1 on single-TC v5e/v6e.
    """
    N, Cin, H, W = x_nchw.shape
    Cout, Cin_w, KH, KW = w_oihw.shape
    assert Cin_w == Cin
    P = pool_size
    Ho, Wo = H - KH + 1, W - KW + 1
    Hp, Wp = Ho // P, Wo // P
    assert Hp >= 1 and Wp >= 1
    Hu, Wu = Hp * P, Wp * P            # conv rows/cols actually used by floor pooling
    PP = P * P
    HpWp = Hp * Wp
    Mlane = ((HpWp + 127) // 128) * 128            # pooled positions, lane-padded
    K2C = KH * KW * Cin
    K_pad = ((K2C + 1 + 7) // 8) * 8               # +1 bias row, sublane-aligned

    if grid_blocks is None:
        grid_blocks = 2 if (N >= 2 and N % 2 == 0) else 1
    G = grid_blocks
    if N % G != 0:
        raise ValueError(f"grid_blocks={G} must divide batch size N={N}")
    nB = N // G
    chunk = nB * Mlane                             # lanes per pool-tap per step

    # ---- im2col in XLA (free layout plumbing), pool-ordered ------------------
    # lane order inside each step: (pool-tap pp, image b, pooled position m)
    slabs = [x_nchw[:, :, kh:kh + Hu, kw:kw + Wu]
             for kh in range(KH) for kw in range(KW)]
    pat = jnp.stack(slabs, axis=1)                 # (N, KH*KW, Cin, Hu, Wu)
    pat = pat.reshape(N, K2C, Hp, P, Wp, P)
    pat = pat.transpose(0, 1, 3, 5, 2, 4)          # (N, K2C, P, P, Hp, Wp)
    pat = pat.reshape(N, K2C, PP, HpWp)
    ones = jnp.ones((N, 1, PP, HpWp), x_nchw.dtype)          # bias row
    pat = jnp.concatenate([pat, ones], axis=1)               # (N, K2C+1, PP, HpWp)
    pat = jnp.pad(pat, ((0, 0), (0, K_pad - K2C - 1),
                        (0, 0), (0, Mlane - HpWp)))          # zero-pad K and lanes
    pat = pat.reshape(G, nB, K_pad, PP, Mlane)
    pat = pat.transpose(0, 2, 3, 1, 4).reshape(G, K_pad, PP * chunk)
    pat = pat.astype(compute_dtype)                # (G, K_pad, PP*chunk), rows >= 512 B

    # PyTorch conv weight (Cout, Cin, KH, KW) -> (Cout, KH*KW*Cin) matching the
    # (kh, kw, cin) K ordering above, with the bias appended as an extra column.
    w_t = jnp.transpose(w_oihw, (0, 2, 3, 1)).reshape(Cout, K2C)
    w_aug = jnp.concatenate([w_t, bias.reshape(Cout, 1)], axis=1)
    w_aug = jnp.pad(w_aug, ((0, 0), (0, K_pad - K2C - 1))).astype(compute_dtype)

    kernel = functools.partial(_block_kernel, PP=PP, chunk=chunk)

    itemsize = jnp.dtype(compute_dtype).itemsize
    cost = pl.CostEstimate(
        flops=2 * G * Cout * K_pad * PP * chunk,
        transcendentals=0,
        bytes_accessed=(pat.size * itemsize + w_aug.size * itemsize
                        + G * Cout * chunk * 4))

    out = pl.pallas_call(
        kernel,
        out_shape=jax.ShapeDtypeStruct((G, Cout, chunk), jnp.float32),
        grid_spec=pltpu.PrefetchScalarGridSpec(
            num_scalar_prefetch=0,
            grid=(G,),
            in_specs=[
                pl.BlockSpec((1, K_pad, PP * chunk), lambda g: (g, 0, 0)),
                pl.BlockSpec((Cout, K_pad), lambda g: (0, 0)),
            ],
            out_specs=pl.BlockSpec((1, Cout, chunk), lambda g: (g, 0, 0)),
        ),
        compiler_params=pltpu.CompilerParams(dimension_semantics=("parallel",)),
        cost_estimate=cost,
    )(pat, w_aug)

    # (G, Cout, nB*Mlane) -> NCHW, dropping the lane padding (free layout in XLA).
    out = out.reshape(G, Cout, nB, Mlane).transpose(0, 2, 1, 3).reshape(N, Cout, Mlane)
    return out[:, :, :HpWp].reshape(N, Cout, Hp, Wp)


def _reference(x_nchw, w_oihw, bias, P):
    """Pure-JAX reference (matches PyTorch Block.forward semantics)."""
    y = lax.conv_general_dilated(
        x_nchw, w_oihw, window_strides=(1, 1), padding="VALID",
        dimension_numbers=("NCHW", "OIHW", "NCHW"))
    y = y + bias.reshape(1, -1, 1, 1)
    y = lax.reduce_window(y, -jnp.inf, lax.max,
                          (1, 1, P, P), (1, 1, P, P), "VALID")
    return jnp.maximum(y, 0.0)


if __name__ == "__main__":
    # Block(in_channels=4, num_filters=8, kernel_size=3, pool_size=2)
    N, Cin, H, W = 2, 4, 16, 16
    Cout, K, P = 8, 3, 2

    key = jax.random.PRNGKey(0)
    kx, kw, kb = jax.random.split(key, 3)

    # Deterministic synthetic parameters (PyTorch-like uniform init scale).
    fan_in = Cin * K * K
    bound = 1.0 / jnp.sqrt(jnp.float32(fan_in))
    w = jax.random.uniform(kw, (Cout, Cin, K, K), jnp.float32, -bound, bound)
    b = jax.random.uniform(kb, (Cout,), jnp.float32, -bound, bound)
    x = jax.random.normal(kx, (N, Cin, H, W), jnp.float32)

    out = block_forward(x, w, b, P)
    out = jax.block_until_ready(out)

    ref = jax.block_until_ready(_reference(x, w, b, P))
    assert out.shape == ref.shape, (out.shape, ref.shape)
    assert jnp.allclose(out, ref, atol=1e-4, rtol=1e-4), (
        float(jnp.max(jnp.abs(out - ref))))

    print("KERNEL_OK")
</pallas_src>

<mosaic_0001>
module attributes {stable_mosaic.version = 11 : i64} {
  func.func @_block_kernel(%arg0: i32, %arg1: memref<1x40x512xf32, #tpu.memory_space<vmem>>, %arg2: memref<8x40xf32, #tpu.memory_space<vmem>>, %arg3: memref<1x8x128xf32, #tpu.memory_space<vmem>>) attributes {dimension_semantics = [#tpu.dimension_semantics<parallel>], iteration_bounds = array<i64: 2>, scalar_prefetch = 0 : i64, scratch_operands = 0 : i64, tpu.core_type = #tpu.core_type<tc>, window_params = [{transform_indices = @transform_0, window_bounds = array<i64: 1, 40, 512>}, {pipeline_mode = #tpu.pipeline_mode<synchronous>, transform_indices = @transform_1, window_bounds = array<i64: 8, 40>}, {transform_indices = @transform_2, window_bounds = array<i64: 1, 8, 128>}]} {
    %c0 = arith.constant 0 : index
    %c0_0 = arith.constant 0 : index
    %0 = vector.load %arg2[%c0, %c0_0] : memref<8x40xf32, #tpu.memory_space<vmem>>, vector<8x40xf32>
    %c0_1 = arith.constant 0 : index
    %c0_2 = arith.constant 0 : index
    %c0_3 = arith.constant 0 : index
    %1 = vector.load %arg1[%c0_1, %c0_2, %c0_3] : memref<1x40x512xf32, #tpu.memory_space<vmem>>, vector<1x40x512xf32>
    %2 = vector.shape_cast %1 : vector<1x40x512xf32> to vector<40x512xf32>
    %cst = arith.constant dense<0.000000e+00> : vector<8x512xf32>
    %3 = tpu.matmul %0, %2, %cst {dimension_numbers = #tpu.dot_dimension_numbers<[1], [0], [0], [1], [0, 0, 1, 1], [], []>} : vector<8x40xf32>, vector<40x512xf32>, vector<8x512xf32> -> vector<8x512xf32>
    %4 = vector.extract_strided_slice %3 {offsets = [0, 0], sizes = [8, 128], strides = [1, 1]} : vector<8x512xf32> to vector<8x128xf32>
    %5 = vector.extract_strided_slice %3 {offsets = [0, 128], sizes = [8, 128], strides = [1, 1]} : vector<8x512xf32> to vector<8x128xf32>
    %6 = arith.maximumf %4, %5 : vector<8x128xf32>
    %7 = vector.extract_strided_slice %3 {offsets = [0, 256], sizes = [8, 128], strides = [1, 1]} : vector<8x512xf32> to vector<8x128xf32>
    %8 = arith.maximumf %6, %7 : vector<8x128xf32>
    %9 = vector.extract_strided_slice %3 {offsets = [0, 384], sizes = [8, 128], strides = [1, 1]} : vector<8x512xf32> to vector<8x128xf32>
    %10 = arith.maximumf %8, %9 : vector<8x128xf32>
    %cst_4 = arith.constant 0.000000e+00 : f32
    %11 = vector.broadcast %cst_4 : f32 to vector<8x128xf32>
    %12 = arith.maximumf %10, %11 : vector<8x128xf32>
    %c0_5 = arith.constant 0 : index
    %c0_6 = arith.constant 0 : index
    %c0_7 = arith.constant 0 : index
    %13 = vector.load %arg3[%c0_5, %c0_6, %c0_7] : memref<1x8x128xf32, #tpu.memory_space<vmem>>, vector<1x8x128xf32>
    %14 = vector.shape_cast %13 : vector<1x8x128xf32> to vector<8x128xf32>
    %15 = vector.shape_cast %12 : vector<8x128xf32> to vector<1x8x128xf32>
    tpu.vector_store %arg3[%c0_5, %c0_6, %c0_7], %15 {strides = array<i32>} : memref<1x8x128xf32, #tpu.memory_space<vmem>>, vector<1x8x128xf32>,
    return
  }
  func.func @transform_0(%arg0: i32) -> (i32, i32, i32) {
    %c0_i32 = arith.constant 0 : i32
    %c0_i32_0 = arith.constant 0 : i32
    %c0_i32_1 = arith.constant 0 : i32
    return %arg0, %c0_i32, %c0_i32_0 : i32, i32, i32
  }
  func.func @transform_1(%arg0: i32) -> (i32, i32) {
    %c0_i32 = arith.constant 0 : i32
    %c0_i32_0 = arith.constant 0 : i32
    %c0_i32_1 = arith.constant 0 : i32
    return %c0_i32, %c0_i32_0 : i32, i32
  }
  func.func @transform_2(%arg0: i32) -> (i32, i32, i32) {
    %c0_i32 = arith.constant 0 : i32
    %c0_i32_0 = arith.constant 0 : i32
    %c0_i32_1 = arith.constant 0 : i32
    return %arg0, %c0_i32, %c0_i32_0 : i32, i32, i32
  }
}

</mosaic_0001>

<bundles_post_ra>
// kernel: tpu_custom_call.1
= control target key start
LH: loop header
LB: loop body
LE: loop exit
PB: predicated region body
PF: predicated region fallthrough
CT: control target
= control target key end

     0   :  { %7 = vsyncpa [#allocation3], 0  ;;  %s904_s0 = inlined_call_operand.hbm [shape: f32[2,40,512], index: 0, kind: input, shape index: {}]   ;;  %s905_s1 = inlined_call_operand.hbm [shape: f32[8,40], index: 1, kind: input, shape index: {}]   ;;  %s906_s2 = inlined_call_operand.hbm [shape: f32[2,8,128], index: 2, kind: output, shape index: {}]  }
   0x1   :  { %9 = vsyncpa [#allocation3 + $0x1], 0 }
   0x2   :  { %10 = vsyncpa [#allocation6], 0 }
   0x3   :  { %11 = vsyncpa [#allocation4], 0 }
   0x4   :  { %13 = vsyncpa [#allocation4 + $0x1], 0  ;;  %s685_s9 = smov 0   ;;  %s687_s10 = smov 0  }
   0x5   :  { %s689_s11 = smov 0   ;;  %s691_s12 = smov 0  }
   0x6 LB: > { %s706_s13 = sadd.s32 4294967295, %s662_s12   ;;  %s441_s14 = sadd.s32 4294967294, %s662_s12   ;;  %s662_s12 = sphi %s691_s12, %s931_s12   ;;  %s658_s11 = sphi %s689_s11, %s930_s11   ;;  %s654_s10 = sphi %s687_s10, %s929_s10   ;;  %s650_s9 = sphi %s685_s9, %s928_s9  }
   0x7   : > { %s710_s15 = sadd.s32 1, %s662_s12   ;;  %s26_s16 = sadd.s32 1, %s658_s11 }
   0x8   : > { %s23_s17 = ssub.s32 %s662_s12, %s710_s15  ;;  %p33_p0 = scmp.ne.s32.totalorder %s658_s11, %s654_s10 }
   0x9   : > { %p24_p1 = scmp.eq.s32.totalorder %s23_s17, 0  ;;  %p34_p2 = scmp.eq.s32.totalorder %s662_s12, 0 }
   0xa   : > { %p39_p3 = scmp.ne.s32.totalorder %s654_s10, %s650_s9  ;;  %p907_p4 = scmp.eq.s32.totalorder %s706_s13, 0 }
   0xb   : > { %s722_s18 = scalar_select %p24_p1, %s658_s11, %s26_s16  }
   0xc   : > { %p724_p5 = por %p34_p2, %p33_p0  ;;  %p730_p6 = por %p907_p4, %p39_p3 }
   0xd   : > { %p84_p7 = scmp.eq.s32.totalorder %s706_s13, 1  ;;  %p90_p8 = scmp.eq.s32.totalorder %s441_s14, 1 }
   0xe   : > { %s913_s20 = scalar_select %p730_p6, 1, 0 }
   0xf   : > { %p442_p9 = scmp.ge.s32.totalorder %s662_s12, 1  ;;  %p97_p10 = scmp.lt.s32.totalorder %s662_s12, 3 }
  0x10   : > { %p737_p11 = por %p84_p7, %p33_p0  ;;  %p741_p12 = por %p90_p8, %p39_p3 }
  0x11   : > { %p745_p13 = pnand %p442_p9, %p97_p10  ;;  %s664_s24 = smov [#allocation5]  }
  0x12   : > { %s914_s21 = scalar_select %p737_p11, 1, 0 }
  0x13   : > { %s915_s22 = scalar_select %p741_p12, 1, 0 }
  0x14   : > { %s916_s23 = scalar_select %p745_p13, 1, 0 }
  0x15   : > { %p482_p2 = pneg %p745_p13  ;;  %s110_s25 = sshll.u32 %s664_s24, 4  ;;  %s111_s25 = int_to_ptr.vmem [resolvable:$true] %s110_s25 }
  0x16   : > { %p495_p4 = scmp.lt.s32.totalorder %s662_s12, 2  ;;  %p917_p0 = scmp.eq.s32.totalorder %s706_s13, 0 }
  0x17   : > { %s121_s27 = sand.u32 1, %s658_s11   ;;  %s534_s4 = scalar_lea.hbm %s905_s1, 128 }
  0x18   : > { %p755_p7 = pnand %p482_p2, %p917_p0  ;;  %p762_p3 = pnand %p495_p4, %p724_p5 }
  0x19   : > { %s471_s29 = smul.u32 160, %s121_s27  ;;  %p535_p8 = scmp.ne.s32.totalorder %s905_s1, %s534_s4 }
  0x1a   : > { %s919_s28 = scalar_select %p762_p3, 1, 0 }
  0x1b   : > { %p536_p9 = pneg %p755_p7  ;;  %p541_p4 = scmp.lt.u32.totalorder %s534_s4, %s905_s1 }
  0x1d   : > { %p537_p10 = pnand %p536_p9, %p535_p8 }
  0x1f   : > { %p538_p2 = pneg %p537_p10 }
  0x21   : > { %p543_p5 = pnand %p541_p4, %p538_p2 }
  0x23   : > { %546 = shalt.err (!%p543_p5)
}
  0x24   : > { %s547_s14 = scalar_lea.vmem %s111_s25, 128  ;;  %p555_p11 = scmp.lt.s32.totalorder %s111_s25, %s111_s25 }
  0x25   : > { %p548_p0 = scmp.ne.s32.totalorder %s111_s25, %s547_s14  ;;  %p556_p6 = scmp.lt.s32.totalorder %s547_s14, %s547_s14 }
  0x27   : > { %p550_p1 = pnand %p548_p0, %p536_p9  ;;  %p557_p13 = por %p556_p6, %p555_p11 }
  0x29   : > { %p551_p12 = pneg %p550_p1 }
  0x2b   : > { %p558_p3 = pnand %p557_p13, %p551_p12 }
  0x2d   : > { %561 = shalt.err (!%p558_p3)
}
  0x2e   : > { %485 = dma.hbm_to_vmem [thread:$0]  (!%p755_p7), %s905_s1, 128, %s111_s25, [#allocation6]  }
  0x2f   : > { %s472_s19 = smul.u32 2560, %s662_s12  ;;  %s125_s24 = scalar_lea.vmem [#allocation2], %s471_s29 }
  0x30   : > { %s132_s30 = sshll.u32 %s125_s24, 4  ;;  %s790_s26 = scalar_lea.sflag [#allocation3], %s121_s27  ;;  %s783_s30 = int_to_ptr.vmem [resolvable:$true] %s132_s30 }
  0x31   : > { %s788_s5 = scalar_lea.hbm %s904_s0, %s472_s19  ;;  %p920_p11 = scmp.ne.s32.totalorder %s919_s28, 0 }
  0x32   : > { %s562_s6 = scalar_lea.hbm %s788_s5, 2560  ;;  %s567_s7 = scalar_lea.hbm %s904_s0, 5120 }
  0x33   : > { %p563_p6 = scmp.ne.s32.totalorder %s788_s5, %s562_s6  ;;  %p564_p12 = pneg %p920_p11 }
  0x34   : > { %p568_p7 = scmp.lt.u32.totalorder %s788_s5, %s904_s0  ;;  %p569_p3 = scmp.lt.u32.totalorder %s567_s7, %s562_s6 }
  0x35   : > { %p565_p13 = pnand %p564_p12, %p563_p6  ;;  %p571_p9 = scmp.lt.u32.totalorder %s562_s6, %s788_s5 }
  0x36   : > { %p570_p8 = por %p569_p3, %p568_p7 }
  0x37   : > { %p566_p1 = pneg %p565_p13 }
  0x38   : > { %p572_p10 = por %p571_p9, %p570_p8 }
  0x3a   : > { %p573_p2 = pnand %p572_p10, %p566_p1 }
  0x3c   : > { %576 = shalt.err (!%p573_p2)
}
  0x3d   : > { %s577_s27 = scalar_lea.vmem %s783_s30, 2560  ;;  %s665_s16 = smov [#allocation2]  }
  0x3e   : > { %p578_p4 = scmp.ne.s32.totalorder %s783_s30, %s577_s27  ;;  %s582_s17 = sshll.u32 %s665_s16, 4  ;;  %s583_s17 = int_to_ptr.vmem [resolvable:$false] %s582_s17 }
  0x3f   : > { %s584_s19 = scalar_lea.vmem %s583_s17, 5120  ;;  %p585_p6 = scmp.lt.s32.totalorder %s783_s30, %s583_s17 }
  0x40   : > { %p580_p5 = pnand %p578_p4, %p564_p12  ;;  %p586_p13 = scmp.lt.s32.totalorder %s584_s19, %s577_s27 }
  0x42   : > { %p581_p0 = pneg %p580_p5  ;;  %p587_p7 = por %p586_p13, %p585_p6 }
  0x44   : > { %p588_p3 = pnand %p587_p7, %p581_p0 }
  0x46   : > { %591 = shalt.err (!%p588_p3)
}
  0x47   : > { %s666_s24 = smov 512   ;;  %s667_s3 = smov 32  }
  0x48   : > { %489 = dma.hbm_to_vmem [thread:$0]  (!%p920_p11), %s788_s5, 2560, %s783_s30, %s790_s26, %s666_s24, %s666_s24, %s667_s3  }
  0x49   : > { %p921_p12 = scmp.ne.s32.totalorder %s916_s23, 0 }
  0x4a   : > { %s821_s4 = sand.u32 (!%p921_p12), 1, %s654_s10   ;;  %p922_p1 = scmp.ne.s32.totalorder (!%p921_p12), %s913_s20, 0 }
  0x4b   : > { %144 = sbr.rel (%p921_p12) target bundleno = 335 (0x14f), region = 28  ;;  %s147_s25 = scalar_lea.sflag (!%p921_p12), [#allocation3], %s821_s4 }
  0x4c   : > { %s473_s6 = smul.u32 (!%p921_p12), 160, %s821_s4 }
  0x4e   : > { %s825_s29 = scalar_lea.vmem (!%p921_p12), [#allocation2], %s473_s6 }
  0x52   : > { %637 = dma.done.wait (%p922_p1), %s147_s25, 2560  }
  0x53   : > { %639 = vsyncadd (%p922_p1), %s147_s25, 4294964736  ;;  %p923_p11 = scmp.eq.s32.totalorder %s706_s13, 0 }
  0x55   : > { %641 = dma.done.wait (%p923_p11), [#allocation6], 128   ;;  %p924_p8 = pmov %p923_p11 }
  0x56   : > { %v668_v0 = vmov 0.0   ;;  %v177_v1 = vld [vmem:[%s825_s29 + $0x8] sm:$0xff]  ;;  %v176_v3 = vld [vmem:[%s825_s29] sm:$0xff]  ;;  %v179_v6 = vld [vmem:[%s825_s29 + $0x18] sm:$0xff]  ;;  %vm196_vm0 = vcmask 326656   ;;  %s448_s20 = sshll.u32 %s821_s4, 3 }
  0x57   : > { %643 = vsyncadd (%p924_p8), [#allocation6], 4294967168  ;;  %264 = vmatprep.mubr.f32.mxu0 %v668_v0  ;;  %335 = vmatprep.mubr.f32.mxu1 %v668_v0  ;;  %v181_v2 = vld [vmem:[%s825_s29 + $0x28] sm:$0xff]  ;;  %v180_v5 = vld [vmem:[%s825_s29 + $0x20] sm:$0xff]  ;;  %s452_s23 = sshll.u32 %s706_s13, 7  ;;  %s174_s28 = scalar_lea.vmem [#allocation7], %s448_s20 }
  0x58   : > { %v455_v4 = vpack.c.bf16 %v181_v2, %v177_v1  ;;  %v183_v7 = vld [vmem:[%s825_s29 + $0x38] sm:$0xff]  ;;  %v457_v8 = vpack.c.bf16 %v180_v5, %v176_v3  ;;  %v178_v10 = vld [vmem:[%s825_s29 + $0x10] sm:$0xff]  ;;  %v185_v12 = vld [vmem:[%s825_s29 + $0x48] sm:$0xff]  ;;  %s361_s30 = sshll.u32 %s174_s28, 4  ;;  %s860_s7 = scalar_lea.hbm %s906_s2, %s452_s23  ;;  %s862_s30 = int_to_ptr.vmem [resolvable:$true] %s361_s30 }
  0x59   : > { %v463_v9 = vpack.c.bf16 %v183_v7, %v179_v6  ;;  %v182_v11 = vld [vmem:[%s825_s29 + $0x30] sm:$0xff]  ;;  %v189_v14 = vld [vmem:[%s825_s29 + $0x68] sm:$0xff]  ;;  %v184_v15 = vld [vmem:[%s825_s29 + $0x40] sm:$0xff]  ;;  %s348_s8 = scalar_lea.sflag [#allocation4], %s821_s4  ;;  %s592_s14 = scalar_lea.vmem %s862_s30, 128 }
  0x5a   : > { %456 = vmatprep.subr.bf16.mxu0 %v455_v4  ;;  %v465_v13 = vpack.c.bf16 %v182_v11, %v178_v10  ;;  %v188_v16 = vld [vmem:[%s825_s29 + $0x60] sm:$0xff]  ;;  %v459_v17 = vpack.c.bf16 %v189_v14, %v185_v12  ;;  %v187_v19 = vld [vmem:[%s825_s29 + $0x58] sm:$0xff]  ;;  %v186_v21 = vld [vmem:[%s825_s29 + $0x50] sm:$0xff]  ;;  %p593_p9 = scmp.ne.s32.totalorder %s862_s30, %s592_s14  ;;  %p925_p10 = scmp.ne.s32.totalorder %s914_s21, 0 }
  0x5b   : > { %458 = vmatpush1.bf16.msra.mxu0 %v457_v8  ;;  %464 = vmatprep.subr.bf16.mxu1 %v463_v9  ;;  %v461_v18 = vpack.c.bf16 %v188_v16, %v184_v15  ;;  %v191_v20 = vld [vmem:[%s825_s29 + $0x78] sm:$0xff]  ;;  %v190_v23 = vld [vmem:[%s825_s29 + $0x70] sm:$0xff]  ;;  %v193_v25 = vld [vmem:[%s825_s29 + $0x88] sm:$0xff]  ;;  %s669_s13 = smov [#allocation7]  }
  0x5c   : > { %466 = vmatpush1.bf16.msra.mxu1 %v465_v13  ;;  %v467_v22 = vpack.c.bf16 %v191_v20, %v187_v19  ;;  %460 = vmatprep.subr.bf16.mxu0 %v459_v17  ;;  %v469_v24 = vpack.c.bf16 %v190_v23, %v186_v21  ;;  %v195_v26 = vld [vmem:[%s825_s29 + $0x98] sm:$0xff]  ;;  %v192_v27 = vld [vmem:[%s825_s29 + $0x80] sm:$0xff]  ;;  %v194_v29 = vld [vmem:[%s825_s29 + $0x90] sm:$0xff]  ;;  %p594_p2 = pnand %p593_p9, %p925_p10  ;;  %s596_s27 = sshll.u32 %s669_s13, 4  ;;  %s597_s27 = int_to_ptr.vmem [resolvable:$false] %s596_s27 }
  0x5d   : > { %v175_v28 = vld [vmem:[#allocation5] sm:$0xff]  ;;  %s598_s16 = scalar_lea.vmem %s597_s27, 256  ;;  %p599_p5 = scmp.lt.s32.totalorder %s862_s30, %s597_s27 }
  0x5e   : > { %468 = vmatprep.subr.bf16.mxu1 %v467_v22  ;;  %p595_p4 = pneg %p594_p2  ;;  %p600_p0 = scmp.lt.s32.totalorder %s598_s16, %s592_s14 }
  0x5f   : > { %462 = vmatpush1.bf16.msra.mxu0 %v461_v18 }
  0x60   : > { %470 = vmatpush1.bf16.msra.mxu1 %v469_v24  ;;  %208 = vmatprep.subr.mxu0 %v193_v25  ;;  %p601_p6 = por %p600_p0, %p599_p5 }
  0x61   : > { %279 = vmatprep.subr.mxu1 %v195_v26 }
  0x62   : > { %p602_p13 = pnand %p601_p6, %p595_p4 }
  0x63   : > { %209 = vmatpush1.msra.mxu0 %v192_v27 }
  0x64   : > { %449 = vmatmul.mubr.msk.f32.vlgmr.msra.gmra.mrb[0].mxu0 %vm196_vm0, %v175_v28  ;;  %280 = vmatpush1.msra.mxu1 %v194_v29 }
  0x65   : > { %450 = vmatmul.mubr.msk.f32.vlgmr.msra.gmra.mrb[0].mxu1 %vm196_vm0, %v175_v28 }
 0x137   : > { %v266_v30 = vpop.f32.mrb[0].mxu0 }
 0x138   : > { %v268_v31 = vpop.f32.mrb[1].mxu0  ;;  %v337_v32 = vpop.f32.mrb[0].mxu1 }
 0x139   : > { %v342_v33 = vmax.f32 %v266_v30, %v268_v31  ;;  %v339_v34 = vpop.f32.mrb[1].mxu1 }
 0x13b   : > { %v343_v35 = vmax.f32 %v342_v33, %v337_v32 }
 0x13d   : > { %v344_v36 = vmax.f32 %v343_v35, %v339_v34 }
 0x13f   : > { %v345_v37 = vmax.f32 %v344_v36, 0.0 }
 0x141   : > { %346 = vst [vmem:[%s174_s28] sm:$0xff] %v345_v37 }
 0x142   : > { %605 = shalt.err (!%p602_p13)
}
 0x143   : > { %s606_s17 = scalar_lea.hbm %s860_s7, 128  ;;  %s610_s3 = scalar_lea.hbm %s906_s2, 256 }
 0x144   : > { %p607_p7 = scmp.ne.s32.totalorder %s860_s7, %s606_s17  ;;  %p611_p1 = scmp.lt.u32.totalorder %s860_s7, %s906_s2 }
 0x145   : > { %p612_p11 = scmp.lt.u32.totalorder %s610_s3, %s606_s17  ;;  %p614_p9 = scmp.lt.u32.totalorder %s606_s17, %s860_s7 }
 0x146   : > { %p608_p3 = pnand %p607_p7, %p925_p10 }
 0x147   : > { %p613_p8 = por %p612_p11, %p611_p1 }
 0x148   : > { %p609_p12 = pneg %p608_p3 }
 0x149   : > { %p615_p2 = por %p614_p9, %p613_p8 }
 0x14b   : > { %p616_p4 = pnand %p615_p2, %p609_p12 }
 0x14d   : > { %619 = shalt.err (!%p616_p4)
}
 0x14e   : > { %480 = dma.vmem_to_hbm [thread:$0]  (%p925_p10), %s862_s30, 128, %s860_s7, %s348_s8  }
 0x14f PF: > { %s373_s25 = sand.u32 1, %s650_s9   ;;  %p926_p5 = scmp.ne.s32.totalorder %s915_s22, 0 }
 0x150   : > { %p927_p0 = scmp.ge.s32.totalorder %s662_s12, 2  ;;  %s374_s29 = scalar_lea.sflag [#allocation4], %s373_s25 }
 0x152   : > { %p491_p6 = pnand %p927_p0, %p926_p5 }
 0x154   : > { %645 = dma.done.wait (!%p491_p6), %s374_s29, 128  }
 0x155   : > { %647 = vsyncadd (!%p491_p6), %s374_s29, 4294967168  ;;  %p16_p13 = scmp.ge.s32.totalorder %s710_s15, 4   ;;  %s928_s9 = smov %s654_s10 }
 0x156   : > { %s929_s10 = smov %s658_s11  ;;  %s930_s11 = smov %s722_s18 }
 0x157   : > { %s931_s12 = smov %s710_s15  ;;  %18 = sbr.rel (!%p16_p13) target bundleno = 6 (0x6), region = 77 }
 0x15e   :  { %379 = vsyncpa [#allocation3], 1 }
 0x15f   :  { %381 = vsyncpa [#allocation3 + $0x1], 1 }
 0x160   :  { %382 = vsyncpa [#allocation6], 1 }
 0x161   :  { %383 = vsyncpa [#allocation4], 1 }
 0x162   :  { %385 = vsyncpa [#allocation4 + $0x1], 1 }

</bundles_post_ra>
